<compile_context>
chip_gen: v7x
topology: tpu7x:2x2x1
jax: 0.10.0
libtpu: 0.0.40
codegen_flags: <defaults>
</compile_context>

<pallas_src>
import functools

import jax
import jax.numpy as jnp
from jax import lax
from jax.experimental import pallas as pl
from jax.experimental.pallas import tpu as pltpu


def _conv1d_cached_kernel(pad_ref, x_ref, w_ref, o_ref, newpad_ref, im_ref, *,
                          B, C_in, K, T, L_out, padding, stride, dilation):
    """Single-shot cached causal conv via one im2col matmul.

    pad_ref:    (B*C_in, max(padding,1))  old streaming pad buffer (rows = (b,c))
    x_ref:      (B*C_in, T)               current chunk
    w_ref:      (C_out, K*C_in + 1)       [W | bias]  (bias fused via ones row)
    o_ref:      (C_out, B*L_out)          lane-dense output slab (cols = (b,j))
    newpad_ref: (B*C_in, max(padding,1))  updated streaming pad buffer
    im_ref:     (K*C_in + 1, B*L_out)     im2col staging buffer (VMEM scratch)
    """
    BL = B * L_out

    # ---- build the (augmented) im2col matrix --------------------------------
    # Row (k*C_in + c), column (b*L_out + j) holds
    #   x_cat[b, c, j*stride + k*dilation],  x_cat = concat([pad_buf, x], -1).
    # All split points are static Python ints, so every copy is a static slice.
    for k in range(K):
        start = k * dilation
        if start >= padding:
            n_pad = 0
        else:
            n_pad = min(-(-(padding - start) // stride), L_out)  # ceil-div
        n_x = L_out - n_pad
        r0 = k * C_in
        for b in range(B):
            s0 = b * C_in
            c0 = b * L_out
            if n_pad > 0:
                if stride == 1:
                    src = pad_ref[s0:s0 + C_in, start:start + n_pad]
                else:
                    # TODO(synk): phase-decompose strided reads (XLU-heavy gather).
                    src = pad_ref[s0:s0 + C_in, pl.ds(start, n_pad, stride=stride)]
                im_ref[r0:r0 + C_in, c0:c0 + n_pad] = src
            if n_x > 0:
                x_start = start + n_pad * stride - padding
                if stride == 1:
                    src = x_ref[s0:s0 + C_in, x_start:x_start + n_x]
                else:
                    src = x_ref[s0:s0 + C_in, pl.ds(x_start, n_x, stride=stride)]
                im_ref[r0:r0 + C_in, c0 + n_pad:c0 + L_out] = src
    # Ones row: pairs with the bias column of w_ref -> bias folded into the MXU.
    im_ref[K * C_in:K * C_in + 1, :] = jnp.ones((1, BL), dtype=im_ref.dtype)

    # ---- one MXU matmul covering every batch and every tap ------------------
    o_ref[...] = jnp.dot(w_ref[...], im_ref[...],
                         preferred_element_type=jnp.float32).astype(o_ref.dtype)

    # ---- streaming-state update: last `padding` cols of [pad_buf | x] -------
    if padding == 0:
        newpad_ref[...] = jnp.zeros_like(newpad_ref)   # dummy; wrapper ignores it
    elif T >= padding:
        newpad_ref[...] = x_ref[:, T - padding:T]
    else:
        newpad_ref[:, 0:padding - T] = pad_ref[:, T:padding]
        newpad_ref[:, padding - T:padding] = x_ref[...]


def conv1d_cached_forward(x, pad_buf, weight, bias, *, stride=1, dilation=1):
    """Functional equivalent of Conv1dCached.forward.

    Args:
      x:       (B, C_in, T)        float32
      pad_buf: (B, C_in, padding)  float32  (streaming state)
      weight:  (C_out, C_in, K)    float32  (PyTorch Conv1d layout)
      bias:    (C_out,)            float32
    Returns:
      y:           (B, C_out, L_out)
      new_pad_buf: (B, C_in, padding)
    """
    B, C_in, T = x.shape
    C_out, C_in_w, K = weight.shape
    assert C_in_w == C_in
    padding = pad_buf.shape[-1]
    T_pad = padding + T
    L_out = (T_pad - dilation * (K - 1) - 1) // stride + 1
    BL = B * L_out
    pad_cols = max(padding, 1)

    # Tiny weight re-layout: (C_out, C_in, K) -> (C_out, K*C_in), + bias column.
    w2 = jnp.transpose(weight, (0, 2, 1)).reshape(C_out, K * C_in)
    w_aug = jnp.concatenate([w2, bias.reshape(C_out, 1)], axis=1)

    # Collapse (B, C_in) onto the sublane axis (contiguous reshapes, free).
    x2d = x.reshape(B * C_in, T)
    if padding > 0:
        pad2d = pad_buf.reshape(B * C_in, padding)
    else:
        pad2d = jnp.zeros((B * C_in, 1), x.dtype)   # dummy, never read

    kernel = functools.partial(
        _conv1d_cached_kernel, B=B, C_in=C_in, K=K, T=T, L_out=L_out,
        padding=padding, stride=stride, dilation=dilation)

    # Rough resident-VMEM estimate (f32, single shot) -> explicit scoped limit.
    needed = 4 * (B * C_in * (T + 2 * pad_cols)
                  + C_out * (K * C_in + 1)
                  + (K * C_in + 1) * BL
                  + C_out * BL)
    vmem_limit = int(min(max(32 * 1024 * 1024, 2 * needed), 48 * 1024 * 1024))

    vmem = pltpu.MemorySpace.VMEM
    y2d, newpad2d = pl.pallas_call(
        kernel,
        out_shape=(jax.ShapeDtypeStruct((C_out, BL), x.dtype),
                   jax.ShapeDtypeStruct((B * C_in, pad_cols), x.dtype)),
        in_specs=[pl.BlockSpec(memory_space=vmem)] * 3,
        out_specs=(pl.BlockSpec(memory_space=vmem),
                   pl.BlockSpec(memory_space=vmem)),
        scratch_shapes=[pltpu.VMEM((K * C_in + 1, BL), x.dtype)],
        compiler_params=pltpu.CompilerParams(vmem_limit_bytes=vmem_limit),
    )(pad2d, x2d, w_aug)

    # Layout plumbing only (tiny): (C_out, B*L_out) -> (B, C_out, L_out).
    y = y2d.reshape(C_out, B, L_out).transpose(1, 0, 2)
    new_pad = pad_buf if padding == 0 else newpad2d.reshape(B, C_in, padding)
    return y, new_pad


# ------------------------------ reference & test ------------------------------

def _reference(x, pad_buf, weight, bias, *, stride, dilation):
    x_cat = jnp.concatenate([pad_buf, x], axis=-1)
    y = lax.conv_general_dilated(
        x_cat, weight,
        window_strides=(stride,),
        padding="VALID",
        rhs_dilation=(dilation,),
        dimension_numbers=("NCH", "OIH", "NCH"),
    )
    return y + bias[None, :, None], x_cat[..., -pad_buf.shape[-1]:]


def _run_case(key, *, B, C_in, C_out, T, K, stride, dilation):
    padding = (K - 1) * dilation
    kx, kw, kb, kp = jax.random.split(key, 4)
    x = jax.random.normal(kx, (B, C_in, T), dtype=jnp.float32)
    weight = jax.random.normal(kw, (C_out, C_in, K), dtype=jnp.float32) * 0.1
    bias = jax.random.normal(kb, (C_out,), dtype=jnp.float32) * 0.1
    # Streaming state; module initializes to zeros -- use nonzero to exercise it.
    pad_buf = jax.random.normal(kp, (B, C_in, padding), dtype=jnp.float32)

    y, new_pad = conv1d_cached_forward(
        x, pad_buf, weight, bias, stride=stride, dilation=dilation
    )
    jax.block_until_ready((y, new_pad))

    y_ref, new_pad_ref = _reference(
        x, pad_buf, weight, bias, stride=stride, dilation=dilation
    )
    assert y.shape == y_ref.shape, (y.shape, y_ref.shape)
    assert jnp.allclose(y, y_ref, atol=1e-5, rtol=1e-5)
    assert new_pad.shape == (B, C_in, padding)
    assert jnp.allclose(new_pad, new_pad_ref)


if __name__ == "__main__":
    key = jax.random.PRNGKey(0)
    k1, k2, k3 = jax.random.split(key, 3)
    # TCN block: Conv1dCausal(in=4, out=8, k=3, stride=1, dilation=2), cached.
    _run_case(k1, B=2, C_in=4, C_out=8, T=16, K=3, stride=1, dilation=2)
    # Larger kernel, dilation=1.
    _run_case(k2, B=2, C_in=4, C_out=8, T=16, K=5, stride=1, dilation=1)
    # Short chunk (T < padding): exercises the pad-buffer carry-over path.
    _run_case(k3, B=2, C_in=4, C_out=8, T=3, K=3, stride=1, dilation=2)
    print("KERNEL_OK")
</pallas_src>

<mosaic_0001>
module attributes {stable_mosaic.version = 11 : i64} {
  func.func @_conv1d_cached_kernel(%arg0: memref<8x4xf32, #tpu.memory_space<vmem>>, %arg1: memref<8x16xf32, #tpu.memory_space<vmem>>, %arg2: memref<8x13xf32, #tpu.memory_space<vmem>>, %arg3: memref<8x32xf32, #tpu.memory_space<vmem>>, %arg4: memref<8x4xf32, #tpu.memory_space<vmem>>, %arg5: memref<13x32xf32, #tpu.memory_space<vmem>>) attributes {dimension_semantics = [], scalar_prefetch = 0 : i64, scratch_operands = 1 : i64, tpu.core_type = #tpu.core_type<tc>} {
    %c0 = arith.constant 0 : index
    %c0_0 = arith.constant 0 : index
    %0 = vector.load %arg0[%c0, %c0_0] : memref<8x4xf32, #tpu.memory_space<vmem>>, vector<4x4xf32>
    %c0_1 = arith.constant 0 : index
    %c0_2 = arith.constant 0 : index
    %1 = vector.load %arg5[%c0_1, %c0_2] : memref<13x32xf32, #tpu.memory_space<vmem>>, vector<4x4xf32>
    tpu.vector_store %arg5[%c0_1, %c0_2], %0 {strides = array<i32>} : memref<13x32xf32, #tpu.memory_space<vmem>>, vector<4x4xf32>,
    %c0_3 = arith.constant 0 : index
    %c0_4 = arith.constant 0 : index
    %2 = vector.load %arg1[%c0_3, %c0_4] : memref<8x16xf32, #tpu.memory_space<vmem>>, vector<4x12xf32>
    %c0_5 = arith.constant 0 : index
    %c4 = arith.constant 4 : index
    %3 = vector.load %arg5[%c0_5, %c4] : memref<13x32xf32, #tpu.memory_space<vmem>>, vector<4x12xf32>
    tpu.vector_store %arg5[%c0_5, %c4], %2 {strides = array<i32>} : memref<13x32xf32, #tpu.memory_space<vmem>>, vector<4x12xf32>,
    %c4_6 = arith.constant 4 : index
    %c0_7 = arith.constant 0 : index
    %4 = vector.load %arg0[%c4_6, %c0_7] : memref<8x4xf32, #tpu.memory_space<vmem>>, vector<4x4xf32>
    %c0_8 = arith.constant 0 : index
    %c16 = arith.constant 16 : index
    %5 = vector.load %arg5[%c0_8, %c16] : memref<13x32xf32, #tpu.memory_space<vmem>>, vector<4x4xf32>
    tpu.vector_store %arg5[%c0_8, %c16], %4 {strides = array<i32>} : memref<13x32xf32, #tpu.memory_space<vmem>>, vector<4x4xf32>,
    %c4_9 = arith.constant 4 : index
    %c0_10 = arith.constant 0 : index
    %6 = vector.load %arg1[%c4_9, %c0_10] : memref<8x16xf32, #tpu.memory_space<vmem>>, vector<4x12xf32>
    %c0_11 = arith.constant 0 : index
    %c20 = arith.constant 20 : index
    %7 = vector.load %arg5[%c0_11, %c20] : memref<13x32xf32, #tpu.memory_space<vmem>>, vector<4x12xf32>
    tpu.vector_store %arg5[%c0_11, %c20], %6 {strides = array<i32>} : memref<13x32xf32, #tpu.memory_space<vmem>>, vector<4x12xf32>,
    %c0_12 = arith.constant 0 : index
    %c2 = arith.constant 2 : index
    %8 = vector.load %arg0[%c0_12, %c2] : memref<8x4xf32, #tpu.memory_space<vmem>>, vector<4x2xf32>
    %c4_13 = arith.constant 4 : index
    %c0_14 = arith.constant 0 : index
    %9 = vector.load %arg5[%c4_13, %c0_14] : memref<13x32xf32, #tpu.memory_space<vmem>>, vector<4x2xf32>
    tpu.vector_store %arg5[%c4_13, %c0_14], %8 {strides = array<i32>} : memref<13x32xf32, #tpu.memory_space<vmem>>, vector<4x2xf32>,
    %c0_15 = arith.constant 0 : index
    %c0_16 = arith.constant 0 : index
    %10 = vector.load %arg1[%c0_15, %c0_16] : memref<8x16xf32, #tpu.memory_space<vmem>>, vector<4x14xf32>
    %c4_17 = arith.constant 4 : index
    %c2_18 = arith.constant 2 : index
    %11 = vector.load %arg5[%c4_17, %c2_18] : memref<13x32xf32, #tpu.memory_space<vmem>>, vector<4x14xf32>
    tpu.vector_store %arg5[%c4_17, %c2_18], %10 {strides = array<i32>} : memref<13x32xf32, #tpu.memory_space<vmem>>, vector<4x14xf32>,
    %c4_19 = arith.constant 4 : index
    %c2_20 = arith.constant 2 : index
    %12 = vector.load %arg0[%c4_19, %c2_20] : memref<8x4xf32, #tpu.memory_space<vmem>>, vector<4x2xf32>
    %c4_21 = arith.constant 4 : index
    %c16_22 = arith.constant 16 : index
    %13 = vector.load %arg5[%c4_21, %c16_22] : memref<13x32xf32, #tpu.memory_space<vmem>>, vector<4x2xf32>
    tpu.vector_store %arg5[%c4_21, %c16_22], %12 {strides = array<i32>} : memref<13x32xf32, #tpu.memory_space<vmem>>, vector<4x2xf32>,
    %c4_23 = arith.constant 4 : index
    %c0_24 = arith.constant 0 : index
    %14 = vector.load %arg1[%c4_23, %c0_24] : memref<8x16xf32, #tpu.memory_space<vmem>>, vector<4x14xf32>
    %c4_25 = arith.constant 4 : index
    %c18 = arith.constant 18 : index
    %15 = vector.load %arg5[%c4_25, %c18] : memref<13x32xf32, #tpu.memory_space<vmem>>, vector<4x14xf32>
    tpu.vector_store %arg5[%c4_25, %c18], %14 {strides = array<i32>} : memref<13x32xf32, #tpu.memory_space<vmem>>, vector<4x14xf32>,
    %c0_26 = arith.constant 0 : index
    %c0_27 = arith.constant 0 : index
    %16 = vector.load %arg1[%c0_26, %c0_27] : memref<8x16xf32, #tpu.memory_space<vmem>>, vector<4x16xf32>
    %c8 = arith.constant 8 : index
    %c0_28 = arith.constant 0 : index
    %17 = vector.load %arg5[%c8, %c0_28] : memref<13x32xf32, #tpu.memory_space<vmem>>, vector<4x16xf32>
    tpu.vector_store %arg5[%c8, %c0_28], %16 {strides = array<i32>} : memref<13x32xf32, #tpu.memory_space<vmem>>, vector<4x16xf32>,
    %c4_29 = arith.constant 4 : index
    %c0_30 = arith.constant 0 : index
    %18 = vector.load %arg1[%c4_29, %c0_30] : memref<8x16xf32, #tpu.memory_space<vmem>>, vector<4x16xf32>
    %c8_31 = arith.constant 8 : index
    %c16_32 = arith.constant 16 : index
    %19 = vector.load %arg5[%c8_31, %c16_32] : memref<13x32xf32, #tpu.memory_space<vmem>>, vector<4x16xf32>
    tpu.vector_store %arg5[%c8_31, %c16_32], %18 {strides = array<i32>} : memref<13x32xf32, #tpu.memory_space<vmem>>, vector<4x16xf32>,
    %cst = arith.constant 1.000000e+00 : f32
    %20 = vector.broadcast %cst : f32 to vector<1x32xf32>
    %c12 = arith.constant 12 : index
    %c0_33 = arith.constant 0 : index
    %21 = vector.load %arg5[%c12, %c0_33] : memref<13x32xf32, #tpu.memory_space<vmem>>, vector<1x32xf32>
    tpu.vector_store %arg5[%c12, %c0_33], %20 {strides = array<i32>} : memref<13x32xf32, #tpu.memory_space<vmem>>, vector<1x32xf32>,
    %c0_34 = arith.constant 0 : index
    %c0_35 = arith.constant 0 : index
    %22 = vector.load %arg2[%c0_34, %c0_35] : memref<8x13xf32, #tpu.memory_space<vmem>>, vector<8x13xf32>
    %c0_36 = arith.constant 0 : index
    %c0_37 = arith.constant 0 : index
    %23 = vector.load %arg5[%c0_36, %c0_37] : memref<13x32xf32, #tpu.memory_space<vmem>>, vector<13x32xf32>
    %cst_38 = arith.constant dense<0.000000e+00> : vector<8x32xf32>
    %24 = tpu.matmul %22, %23, %cst_38 {dimension_numbers = #tpu.dot_dimension_numbers<[1], [0], [0], [1], [0, 0, 1, 1], [], []>} : vector<8x13xf32>, vector<13x32xf32>, vector<8x32xf32> -> vector<8x32xf32>
    %c0_39 = arith.constant 0 : index
    %c0_40 = arith.constant 0 : index
    %25 = vector.load %arg3[%c0_39, %c0_40] : memref<8x32xf32, #tpu.memory_space<vmem>>, vector<8x32xf32>
    tpu.vector_store %arg3[%c0_39, %c0_40], %24 {strides = array<i32>} : memref<8x32xf32, #tpu.memory_space<vmem>>, vector<8x32xf32>,
    %c0_41 = arith.constant 0 : index
    %c12_42 = arith.constant 12 : index
    %26 = vector.load %arg1[%c0_41, %c12_42] : memref<8x16xf32, #tpu.memory_space<vmem>>, vector<8x4xf32>
    %c0_43 = arith.constant 0 : index
    %c0_44 = arith.constant 0 : index
    %27 = vector.load %arg4[%c0_43, %c0_44] : memref<8x4xf32, #tpu.memory_space<vmem>>, vector<8x4xf32>
    tpu.vector_store %arg4[%c0_43, %c0_44], %26 {strides = array<i32>} : memref<8x4xf32, #tpu.memory_space<vmem>>, vector<8x4xf32>,
    return
  }
}

</mosaic_0001>

<bundles_post_ra>
// kernel: tpu_custom_call.1
= control target key start
LH: loop header
LB: loop body
LE: loop exit
PB: predicated region body
PF: predicated region fallthrough
CT: control target
= control target key end

     0   :  { %s243_s19 = smov 2   ;;  %s244_s20 = smov 126   ;;  %vm18_vm0 = vcmask 27648   ;;  %vm70_vm1 = vcmask 125952   ;;  %vm79_vm2 = vcmask 253952   ;;  %s333_s0 = inlined_call_operand.vmem [shape: f32[8,4], index: 0, kind: input, shape index: {}]   ;;  %s334_s1 = inlined_call_operand.vmem [shape: f32[8,16], index: 1, kind: input, shape index: {}]   ;;  %s335_s2 = inlined_call_operand.vmem [shape: f32[8,13], index: 2, kind: input, shape index: {}]   ;;  %s336_s3 = inlined_call_operand.hbm [shape: f32[8,32], index: 3, kind: output, shape index: {0}]   ;;  %s337_s4 = inlined_call_operand.vmem [shape: f32[8,4], index: 4, kind: output, shape index: {1}]  }
   0x1   :  { %v48_v0 = vld [vmem:[%s334_s1] sm:$0xf]  ;;  %v27_v2 = vld [vmem:[%s333_s0 + $0x4] sm:$0xf]  ;;  %s245_s29 = smov 16   ;;  %s246_s30 = smov 4  }
   0x2   :  { %v41_v1 = vld [vmem:[%s333_s0] sm:$0xf]  ;;  %50 = vrot.lane.b32.xlu1 %v48_v0, %s243_s19  ;;  %v34_v4 = vld [vmem:[%s334_s1 + $0x4] sm:$0xf] }
   0x3   :  { %43 = vrot.lane.b32.xlu0 %v41_v1, %s244_s20  ;;  %v20_v3 = vld [vmem:[%s334_s1] sm:$0xf]  ;;  %v55_v6 = vld [vmem:[%s333_s0 + $0x4] sm:$0xf] }
   0x4   :  { %v17_v5 = vld [vmem:[%s333_s0] sm:$0xf] }
   0x5   :  { %19 = vst.msk [vmem:[#allocation2] sm:$0xf] %vm18_vm0, %v17_v5  ;;  %v69_v7 = vld [vmem:[%s334_s1] sm:$0xf] }
   0x6   :  { %29 = vrot.lane.b32.xlu1 %v27_v2, %s245_s29  ;;  %71 = vst.msk [vmem:[#allocation2 + $0x8] sm:$0xf] %vm70_vm1, %v69_v7 }
   0x7   :  { %22 = vrot.lane.b32.xlu0 %v20_v3, %s246_s30 }
   0x8   :  { %10 = vsyncpa [#allocation4], 0  ;;  %v247_v8 = vmov 0.0|0.0   ;;  %v248_v9 = vmov 1.0   ;;  %s249_s9 = smov 20   ;;  %s250_s10 = smov 14  }
   0x9   :  { %201 = vmatprep.subr.bf16.mxu0 %v247_v8  ;;  %80 = vst.msk [vmem:[#allocation2 + $0xc] sm:$0x1] %vm79_vm2, %v248_v9  ;;  %v72_v10 = vld [vmem:[%s334_s1 + $0x4] sm:$0xf]  ;;  %vm251_vm3 = vmmov 0   ;;  %v252_v12 = vmov 0.0  }
   0xa   :  { %36 = vrot.lane.b32.xlu1 %v34_v4, %s249_s9  ;;  %v62_v11 = vld [vmem:[%s334_s1 + $0x4] sm:$0xf]  ;;  %198 = vmatprep.mubr.msk.f32.mxu0 %vm251_vm3, %v252_v12  ;;  %s253_s14 = smov 18   ;;  %s254_s17 = smov 116   ;;  %vm46_vm4 = vcmask 11264   ;;  %vm53_vm5 = vcmask 125968  }
   0xb   :  { %57 = vrot.lane.b32.xlu0 %v55_v6, %s250_s10  ;;  %v164_v13 = vld [vmem:[%s334_s1] sm:$0xff]  ;;  %vm25_vm6 = vcmask 125984   ;;  %vm32_vm7 = vcmask 158848   ;;  %vm39_vm8 = vcmask 257184   ;;  %vm60_vm9 = vcmask 142464   ;;  %s256_s21 = smov [#allocation3]  }
   0xc   :  { %vm77_vm10 = vcmask 257152   ;;  %vm67_vm11 = vcmask 257168   ;;  %vm88_vm12 = vcmask 1044480   ;;  %vm255_vm13 = vmmov 1   ;;  %v81_v25 = vld [vmem:[%s335_s2] sm:$0xff]  ;;  %s177_s22 = sshll.u32 %s256_s21, 4  ;;  %s178_s22 = int_to_ptr.vmem [resolvable:$true] %s177_s22 }
   0xd   :  { %vm203_vm14 = vmpackc.low %vm88_vm12, %vm255_vm13  ;;  %vm84_vm15 = vcmask 105472   ;;  %vm169_vm0 = vcmask 31744   ;;  %vm162_vm1 = vcmask 261120   ;;  %s219_s23 = scalar_lea.vmem %s178_s22, 128  ;;  %p224_p1 = scmp.lt.s32.totalorder %s178_s22, %s178_s22 }
   0xe   :  { %74 = vrot.lane.b32.xlu1 %v72_v10, %s245_s29  ;;  %p220_p0 = scmp.ne.s32.totalorder %s178_s22, %s219_s23  ;;  %p225_p2 = scmp.lt.s32.totalorder %s219_s23, %s219_s23 }
   0xf   :  { %64 = vrot.lane.b32.xlu0 %v62_v11, %s253_s14 }
  0x10   :  { %p226_p3 = por %p225_p2, %p224_p1 }
  0x12   :  { %p227_p4 = pnand %p226_p3, %p220_p0 }
  0x13   :  { %166 = vrot.lane.b32.xlu0 %v164_v13, %s254_s17 }
  0x74   :  { %v51_v14 = vpop.permute.xlu1 %50 }
  0x75   :  { %v44_v15 = vpop.permute.xlu0 %43 }
  0x76   :  { %47 = vst.msk [vmem:[#allocation2 + $0x4] sm:$0xf] %vm46_vm4, %v44_v15 }
  0x77   :  { %54 = vst.msk [vmem:[#allocation2 + $0x4] sm:$0xf] %vm53_vm5, %v51_v14 }
  0x78   :  { %v30_v16 = vpop.permute.xlu1 %29 }
  0x79   :  { %v23_v17 = vpop.permute.xlu0 %22 }
  0x7a   :  { %26 = vst.msk [vmem:[#allocation2] sm:$0xf] %vm25_vm6, %v23_v17 }
  0x7b   :  { %33 = vst.msk [vmem:[#allocation2] sm:$0xf] %vm32_vm7, %v30_v16 }
  0x7c   :  { %v37_v18 = vpop.permute.xlu1 %36 }
  0x7d   :  { %v58_v19 = vpop.permute.xlu0 %57  ;;  %40 = vst.msk [vmem:[#allocation2] sm:$0xf] %vm39_vm8, %v37_v18 }
  0x7e   :  { %61 = vst.msk [vmem:[#allocation2 + $0x4] sm:$0xf] %vm60_vm9, %v58_v19 }
  0x80   :  { %v75_v20 = vpop.permute.xlu1 %74 }
  0x81   :  { %v65_v21 = vpop.permute.xlu0 %64  ;;  %78 = vst.msk [vmem:[#allocation2 + $0x8] sm:$0xf] %vm77_vm10, %v75_v20 }
  0x82   :  { %68 = vst.msk [vmem:[#allocation2 + $0x4] sm:$0xf] %vm67_vm11, %v65_v21 }
  0x85   :  { %v167_v26 = vpop.permute.xlu0 %166 }
  0x86   :  { %170 = vst.msk [vmem:[%s337_s4] sm:$0xff] %vm169_vm0, %v167_v26 }
  0x88   :  { %v83_v23 = vld [vmem:[#allocation2 + $0x8] sm:$0x1f] }
  0x89   :  { %v82_v22 = vld [vmem:[#allocation2] sm:$0xff] }
  0x8a   :  { %v202_v24 = vpack.c.bf16 %v83_v23, %v82_v22 }
  0x8c   :  { %204 = vmatpush3.bf16.msk.msra.mxu0 %vm203_vm14, %v202_v24 }
  0x8f   :  { %199 = vmatmul.mubr.msk.f32.vlgmr.msra.gmra.mrb[0].mxu0 %vm84_vm15, %v81_v25 }
 0x162   :  { %v158_v27 = vpop.f32.mrb[0].mxu0 }
 0x163   :  { %163 = vst.msk [vmem:[#allocation3] sm:$0xff] %vm162_vm1, %v158_v27  ;;  %v200_v28 = vpop.f32.mrb[1].mxu0 }
 0x164   :  { %230 = shalt.err (!%p227_p4)
}
 0x165   :  { %s231_s25 = scalar_lea.hbm %s336_s3, 128 }
 0x166   :  { %p232_p5 = scmp.ne.s32.totalorder %s336_s3, %s231_s25  ;;  %p235_p6 = scmp.lt.u32.totalorder %s231_s25, %s336_s3 }
 0x168   :  { %p237_p7 = pnand %p235_p6, %p232_p5 }
 0x16a   :  { %240 = shalt.err (!%p237_p7)
}
 0x16b   :  { %180 = dma.vmem_to_hbm [thread:$0]  %s178_s22, 128, %s336_s3, [#allocation4]  }
 0x16c   :  { %241 = dma.done.wait [#allocation4], 128  }
 0x16d   :  { %242 = vsyncadd [#allocation4], 4294967168 }
 0x16e   :  { %188 = vsyncpa [#allocation4], 1 }

</bundles_post_ra>
